<compile_context>
chip_gen: v7x
topology: tpu7x:2x2x1
jax: 0.10.0
libtpu: 0.0.40
codegen_flags: <defaults>
</compile_context>

<pallas_src>
import functools

import numpy as np
import jax
import jax.numpy as jnp
from jax.experimental import pallas as pl
from jax.experimental.pallas import tpu as pltpu

_LANE = 128


def _round_up(x, m):
    return ((x + m - 1) // m) * m


def _cdiv(a, b):
    return (a + b - 1) // b


def _rank_kernel(pos_row, sc_ref, rank_ref):
    # sc_ref:   (C, TM) f32 — candidates on sublanes, samples on lanes.
    #           Row `pos_row` (the last row) holds each sample's positive score.
    # rank_ref: (1, TM) f32 — lane-dense per-sample rank.
    sc = sc_ref[...]                                   # (C, TM)
    pos = sc[pos_row:pos_row + 1, :]                   # (1, TM) static sublane slice
    beats = (sc >= pos).astype(jnp.float32)            # (C, TM); pos row contributes 1
    # rank = 1 + #{neg >= pos}  (positive placed last under the stable sort)
    rank_ref[...] = jnp.sum(beats, axis=0, keepdims=True)   # (1, TM), exact counts


def _scoped_vmem_bytes():
    # Generation-aware scoped-VMEM target: v7x has 64 MiB physical (32 MiB scoped
    # default); v5e/v6e have 128 MiB physical so 64 MiB scoped is safe.
    try:
        cap = int(pltpu.get_tpu_info().vmem_capacity_bytes)
    except Exception:
        cap = None
    if cap is not None and cap >= 128 * 1024 * 1024:
        return 64 * 1024 * 1024
    return 32 * 1024 * 1024


def _choose_tile(num_pos, c, scoped_bytes):
    # VMEM per input block ≈ round_up(c, 8) * tm * 4 B (sublane padding only; the
    # sample axis is lane-dense). Pipeline double-buffers it -> keep 2*block well
    # inside the scoped budget; outputs are tiny.
    c_pad8 = _round_up(c, 8)
    budget = scoped_bytes // 4
    tm_cap = max(_LANE, (budget // (4 * c_pad8)) // _LANE * _LANE)
    tm_cap = min(tm_cap, 32 * 1024)        # step overhead (~0.35 µs) already amortized
    p128 = _round_up(max(num_pos, 1), _LANE)
    nsteps = _cdiv(p128, tm_cap)
    if p128 >= 2 * _LANE:
        nsteps = max(nsteps, 2)            # >=2 grid steps -> both TensorCores on v7x
    tm = _round_up(_cdiv(p128, nsteps), _LANE)
    return tm, nsteps * tm


def matrix_forward(n, num, predict_val, num_pos, index):
    """Mirrors Matrix.forward(n, num, predict_val, num_pos, index)."""
    c = num + 1                                       # negatives + the positive
    scoped = _scoped_vmem_bytes()
    tm, p_pad = _choose_tile(num_pos, c, scoped)

    # Glue (XLA): reorder predict_val by the stable argsort of `index`, then a
    # single gather writes the kernel layout directly (candidates on sublanes,
    # samples on lanes, positive appended as last row, sample axis padded to the
    # tile multiple by clamping indices — no jnp.pad / transpose passes).
    # TODO(synk): the element-level permutation gather stays in XLA; fusing it
    # into the kernel would need per-element manual DMA, not worth it here.
    order = jnp.argsort(index, stable=True)
    pv = jnp.take(predict_val, order).astype(jnp.float32)

    cols = np.minimum(np.arange(p_pad), num_pos - 1)            # clamp pad lanes
    gidx = np.empty((c, p_pad), np.int32)
    gidx[:num, :] = num_pos + cols[None, :] * num + np.arange(num)[:, None]
    gidx[num, :] = cols                                         # positive-score row
    scores_t = jnp.take(pv, jnp.asarray(gidx))                  # (C, p_pad) f32

    grid = (p_pad // tm,)
    rank_row = pl.pallas_call(
        functools.partial(_rank_kernel, num),
        out_shape=jax.ShapeDtypeStruct((1, p_pad), jnp.float32),
        grid=grid,
        in_specs=[
            # Last dim tm is a lane multiple; second-minor dim equals the full
            # array dim (c), so no HBM padding of the candidate axis is needed.
            pl.BlockSpec((c, tm), lambda i: (0, i)),
        ],
        out_specs=pl.BlockSpec((1, tm), lambda i: (0, i)),
        compiler_params=pltpu.CompilerParams(
            dimension_semantics=("parallel",),
            vmem_limit_bytes=scoped),
    )(scores_t)

    rank = rank_row[0, :num_pos]
    in_topn = rank <= jnp.float32(n)
    sample_hit = in_topn.astype(jnp.float32)
    # dcg at the positive's slot = 1/log2(rank+1); idcg = dcg(1,1) = 1 (exact math;
    # the kernel is HBM-bound so there is no reason to approximate here).
    sample_ndcg = jnp.where(in_topn, 1.0 / jnp.log2(rank + 1.0),
                            jnp.float32(0.0))
    hits_mean = jnp.mean(sample_hit)
    ndcg_mean = jnp.mean(sample_ndcg)
    return hits_mean, ndcg_mean, sample_hit, sample_ndcg


def _reference_forward(n, num, predict_val, num_pos, index):
    """Pure NumPy reference of the same deterministic semantics."""
    order = np.argsort(np.asarray(index), kind="stable")
    pv = np.asarray(predict_val, dtype=np.float32)[order]
    sample_hit, sample_ndcg = [], []
    for i in range(num_pos):
        negs = pv[num_pos + i * num: num_pos + (i + 1) * num]
        posv = pv[i]
        rank = 1 + int(np.sum(negs >= posv))
        h = 1.0 if rank <= n else 0.0
        nd = (1.0 / np.log2(rank + 1.0)) if rank <= n else 0.0
        sample_hit.append(h)
        sample_ndcg.append(nd)
    return (float(np.mean(sample_hit)), float(np.mean(sample_ndcg)),
            np.array(sample_hit, np.float32), np.array(sample_ndcg, np.float32))


if __name__ == "__main__":
    # Small shapes implied by forward(): predict_val has num_pos + num_pos*num scores.
    n, num, num_pos = 5, 16, 8
    total = num_pos * (num + 1)  # 136

    key = jax.random.PRNGKey(0)
    k1, k2 = jax.random.split(key)
    predict_val = jax.random.normal(k1, (total,), dtype=jnp.float32)
    index = jax.random.permutation(k2, total)   # arbitrary sortable index values

    hits, ndcg, sample_hit, sample_ndcg = matrix_forward(
        n, num, predict_val, num_pos, index)
    (hits, ndcg, sample_hit, sample_ndcg) = jax.block_until_ready(
        (hits, ndcg, sample_hit, sample_ndcg))

    r_hits, r_ndcg, r_sh, r_snd = _reference_forward(
        n, num, np.asarray(predict_val), num_pos, np.asarray(index))

    # Exact counting + exact log2 path -> tight tolerances.
    np.testing.assert_allclose(np.asarray(hits), r_hits, rtol=1e-6, atol=1e-6)
    np.testing.assert_allclose(np.asarray(sample_hit), r_sh, rtol=1e-6, atol=1e-6)
    np.testing.assert_allclose(np.asarray(ndcg), r_ndcg, rtol=1e-5, atol=1e-6)
    np.testing.assert_allclose(np.asarray(sample_ndcg), r_snd, rtol=1e-5, atol=1e-6)

    print("KERNEL_OK")
</pallas_src>

<mosaic_0001>
module attributes {stable_mosaic.version = 11 : i64} {
  func.func @_rank_kernel(%arg0: i32, %arg1: memref<17x128xf32, #tpu.memory_space<vmem>>, %arg2: memref<1x128xf32, #tpu.memory_space<vmem>>) attributes {dimension_semantics = [#tpu.dimension_semantics<parallel>], iteration_bounds = array<i64: 1>, scalar_prefetch = 0 : i64, scratch_operands = 0 : i64, tpu.core_type = #tpu.core_type<tc>, window_params = [{transform_indices = @transform_0, window_bounds = array<i64: 17, 128>}, {transform_indices = @transform_1, window_bounds = array<i64: 1, 128>}]} {
    %c0 = arith.constant 0 : index
    %c0_0 = arith.constant 0 : index
    %0 = vector.load %arg1[%c0, %c0_0] : memref<17x128xf32, #tpu.memory_space<vmem>>, vector<17x128xf32>
    %1 = vector.extract_strided_slice %0 {offsets = [16, 0], sizes = [1, 128], strides = [1, 1]} : vector<17x128xf32> to vector<1x128xf32>
    %2 = vector.broadcast %1 : vector<1x128xf32> to vector<17x128xf32>
    %3 = arith.cmpf oge, %0, %2 : vector<17x128xf32>
    %4 = arith.extui %3 : vector<17x128xi1> to vector<17x128xi32>
    %5 = arith.sitofp %4 : vector<17x128xi32> to vector<17x128xf32>
    %cst = arith.constant dense<0.000000e+00> : vector<128xf32>
    %6 = vector.multi_reduction <add>, %5, %cst [0] : vector<17x128xf32> to vector<128xf32>
    %7 = vector.shape_cast %6 : vector<128xf32> to vector<1x128xf32>
    %c0_1 = arith.constant 0 : index
    %c0_2 = arith.constant 0 : index
    %8 = vector.load %arg2[%c0_1, %c0_2] : memref<1x128xf32, #tpu.memory_space<vmem>>, vector<1x128xf32>
    tpu.vector_store %arg2[%c0_1, %c0_2], %7 {strides = array<i32>} : memref<1x128xf32, #tpu.memory_space<vmem>>, vector<1x128xf32>,
    return
  }
  func.func @transform_0(%arg0: i32) -> (i32, i32) {
    %c0_i32 = arith.constant 0 : i32
    %c0_i32_0 = arith.constant 0 : i32
    return %c0_i32, %arg0 : i32, i32
  }
  func.func @transform_1(%arg0: i32) -> (i32, i32) {
    %c0_i32 = arith.constant 0 : i32
    %c0_i32_0 = arith.constant 0 : i32
    return %c0_i32, %arg0 : i32, i32
  }
}

</mosaic_0001>

<bundles_post_ra>
// kernel: tpu_custom_call.1
= control target key start
LH: loop header
LB: loop body
LE: loop exit
PB: predicated region body
PF: predicated region fallthrough
CT: control target
= control target key end

     0   :  { %6 = vsyncpa [#allocation3], 0  ;;  %s160_s0 = inlined_call_operand.hbm [shape: f32[17,128], index: 0, kind: input, shape index: {}]   ;;  %s161_s1 = inlined_call_operand.hbm [shape: f32[1,128], index: 1, kind: output, shape index: {}]  }
   0x1   :  { %7 = vsyncpa [#allocation4], 0  ;;  %s121_s6 = smov [#allocation2]   ;;  %s73_s10 = scalar_lea.hbm %s160_s0, 384 }
   0x2   :  { %s13_s7 = sshll.u32 %s121_s6, 4  ;;  %p74_p0 = scmp.ne.s32.totalorder %s160_s0, %s73_s10  ;;  %s14_s7 = int_to_ptr.vmem [resolvable:$true] %s13_s7 }
   0x3   :  { %p77_p1 = scmp.lt.u32.totalorder %s73_s10, %s160_s0 }
   0x5   :  { %p79_p2 = pnand %p77_p1, %p74_p0 }
   0x7   :  { %82 = shalt.err (!%p79_p2)
}
   0x8   :  { %s83_s15 = scalar_lea.vmem %s14_s7, 384  ;;  %p88_p4 = scmp.lt.s32.totalorder %s14_s7, %s14_s7 }
   0x9   :  { %p84_p3 = scmp.ne.s32.totalorder %s14_s7, %s83_s15  ;;  %p89_p5 = scmp.lt.s32.totalorder %s83_s15, %s83_s15 }
   0xb   :  { %p90_p6 = por %p89_p5, %p88_p4 }
   0xd   :  { %p91_p7 = pnand %p90_p6, %p84_p3 }
   0xf   :  { %94 = shalt.err (!%p91_p7)
}
  0x10   :  { %s122_s16 = smov 128   ;;  %s123_s17 = smov 8  }
  0x11   :  { %19 = dma.hbm_to_vmem [thread:$0]  %s160_s0, 384, %s14_s7, [#allocation3], %s122_s16, %s122_s16, %s123_s17  }
  0x12   :  { %117 = dma.done.wait [#allocation3], 384  }
  0x13   :  { %118 = vsyncadd [#allocation3], 4294966912  ;;  %v26_v0 = vlaneseq  ;;  %v23_v3 = vld [vmem:[#allocation2] sm:$0xff]  ;;  %v24_v4 = vld [vmem:[#allocation2 + $0x8] sm:$0xff]  ;;  %vm40_vm0 = vcmask 1040384   ;;  %v124_v7 = vmov 0.0  }
  0x14   :  { %v25_v5 = vld [vmem:[#allocation2 + $0x10] sm:$0x1]  ;;  %s125_s0 = smov [#allocation5]  }
  0x15   :  { %v27_v1 = vshrl.u32 %v26_v0, 7  ;;  %s56_s20 = sshll.u32 %s125_s0, 4  ;;  %s57_s20 = int_to_ptr.vmem [resolvable:$true] %s56_s20 }
  0x16   :  { %s95_s21 = scalar_lea.vmem %s57_s20, 16  ;;  %s99_s22 = scalar_lea.vmem %s57_s20, 32 }
  0x17   :  { %v28_v2 = vsub.s32 0, %v27_v1  ;;  %p96_p8 = scmp.ne.s32.totalorder %s57_s20, %s95_s21  ;;  %p100_p9 = scmp.lt.s32.totalorder %s57_s20, %s57_s20 }
  0x18   :  { %p101_p10 = scmp.lt.s32.totalorder %s99_s22, %s95_s21 }
  0x19   :  { %v29_v6 = vrot.slane %v25_v5, %v28_v2 }
  0x1a   :  { %p102_p11 = por %p101_p10, %p100_p9 }
  0x1b   :  { %vm30_vm1 = vcmp.ge.f32.partialorder %v23_v3, %v29_v6  ;;  %vm31_vm2 = vcmp.ge.f32.partialorder %v24_v4, %v29_v6  ;;  %vm32_vm3 = vcmp.ge.f32.partialorder %v25_v5, %v29_v6 }
  0x1c   :  { %v65_v8 = vsel %vm30_vm1, 1.0, %v124_v7  ;;  %v66_v9 = vsel %vm31_vm2, 1.0, %v124_v7  ;;  %v67_v10 = vsel %vm32_vm3, 1.0, %v124_v7  ;;  %p103_p12 = pnand %p102_p11, %p96_p8 }
  0x1d   :  { %v39_v11 = vadd.f32 %v66_v9, %v65_v8  ;;  %v41_v12 = vsel %vm40_vm0, %v67_v10, 0.0 }
  0x1f   :  { %v42_v13 = vadd.f32 %v41_v12, %v39_v11 }
  0x21   :  { %v43_v14 = vrot.slane %v42_v13, 4 }
  0x23   :  { %v44_v15 = vadd.f32 %v43_v14, %v42_v13 }
  0x25   :  { %v45_v16 = vrot.slane %v44_v15, 2 }
  0x27   :  { %v46_v17 = vadd.f32 %v45_v16, %v44_v15 }
  0x29   :  { %v47_v18 = vrot.slane %v46_v17, 1 }
  0x2b   :  { %v48_v19 = vadd.f32 %v47_v18, %v46_v17 }
  0x2d   :  { %49 = vst [vmem:[#allocation5] sm:$0x1] %v48_v19 }
  0x2e   :  { %106 = shalt.err (!%p103_p12)
}
  0x2f   :  { %s107_s25 = scalar_lea.hbm %s161_s1, 16 }
  0x30   :  { %p108_p13 = scmp.ne.s32.totalorder %s161_s1, %s107_s25  ;;  %p111_p0 = scmp.lt.u32.totalorder %s107_s25, %s161_s1 }
  0x32   :  { %p113_p1 = pnand %p111_p0, %p108_p13 }
  0x34   :  { %116 = shalt.err (!%p113_p1)
}
  0x35   :  { %59 = dma.vmem_to_hbm [thread:$0]  %s57_s20, 16, %s161_s1, [#allocation4]  }
  0x36   :  { %119 = dma.done.wait [#allocation4], 16  }
  0x37   :  { %120 = vsyncadd [#allocation4], 4294967280 }
  0x38   :  { %63 = vsyncpa [#allocation3], 1 }
  0x39   :  { %64 = vsyncpa [#allocation4], 1 }

</bundles_post_ra>
